<compile_context>
chip_gen: v5e
topology: v5e:2x2
jax: 0.10.0
libtpu: 0.0.40
codegen_flags: <defaults>
</compile_context>

<pallas_src>
import jax
import jax.numpy as jnp
from jax.experimental import pallas as pl
from jax.experimental.pallas import tpu as pltpu

BN_EPS = 1e-5
LANE = 128


def _round_up(n, m):
    return ((n + m - 1) // m) * m


# ---------------------------------------------------------------------------
# One-time parameter preparation (hoisted out of the per-call path).
# ---------------------------------------------------------------------------
def prepare_params(params):
    """Cast to f32 and lane-pad ONCE.

    - first layer keeps its NATURAL input width (so raw x/x_n never need padding)
    - every layer's output width (and the next layer's input width) is padded to
      a 128-lane multiple; the LAST layer gets at least one spare column so the
      NONA stage can fold ||x_n||^2 into the cross matmul.
    Zero padding is an exact no-op through BN/Linear/Tanh: padded activation
    columns stay exactly 0 because padded w rows/cols, biases, gammas and betas
    are 0 and tanh(0) = 0.  (Only valid because activations are never padded on
    the host -- padded columns are created inside the kernel and start at 0.)
    Returns (flat_padded_params, natural_last_width).
    """
    n_layers = len(params)
    in_width = params[0][2].shape[0]          # natural input width for layer 0
    flat = []
    d_last = None
    for i, (gamma, beta, w, bias) in enumerate(params):
        din, dout = w.shape
        pin = in_width
        extra = 1 if i == n_layers - 1 else 0  # spare zero column for xn2 fold
        pout = _round_up(dout + extra, LANE)
        flat += [
            jnp.pad(gamma.astype(jnp.float32), ((0, 0), (0, pin - din))),
            jnp.pad(beta.astype(jnp.float32), ((0, 0), (0, pin - din))),
            jnp.pad(w.astype(jnp.float32), ((0, pin - din), (0, pout - dout))),
            jnp.pad(bias.astype(jnp.float32), ((0, 0), (0, pout - dout))),
        ]
        in_width = pout
        d_last = dout
    return tuple(flat), d_last


# ---------------------------------------------------------------------------
# Single fused kernel: [BN -> Linear -> Tanh] x n_layers (x and x_n share each
# MXU/tanh pass) + NONA euclidean similarity + softmax + label mix + clip.
# ---------------------------------------------------------------------------
def make_fused_kernel(n_layers, B, N, d_last):
    def kernel(*refs):
        x_ref, xn_ref, y_ref = refs[0], refs[1], refs[2]
        p_refs = refs[3:3 + 4 * n_layers]            # (gamma, beta, w, bias) per layer
        o_ref = refs[3 + 4 * n_layers]
        cat_ref = refs[3 + 4 * n_layers + 1]         # VMEM scratch (B+N, D_in)

        # Stack queries on top of neighbors once (tile-aligned: B == 8 sublanes),
        # so every layer needs a single MXU pass and a single tanh pass.
        cat_ref[:B, :] = x_ref[...]
        cat_ref[B:, :] = xn_ref[...]
        cat = cat_ref[...]                           # (B+N, D_in), VMEM/vreg resident

        row = jax.lax.broadcasted_iota(jnp.int32, (B + N, 1), 0)
        is_q = row < B                               # query rows vs neighbor rows

        for i in range(n_layers):
            g_ref, b_ref, w_ref, bias_ref = p_refs[4 * i: 4 * i + 4]
            gamma = g_ref[...]
            beta = b_ref[...]

            # BatchNorm1d, training-mode forward (biased batch variance), with
            # SEPARATE statistics for the query batch and the neighbor batch.
            qs = cat[:B]                             # static, tile-aligned slices
            ns = cat[B:]
            mq = jnp.mean(qs, axis=0, keepdims=True)
            vq = jnp.mean((qs - mq) ** 2, axis=0, keepdims=True)
            mn = jnp.mean(ns, axis=0, keepdims=True)
            vn = jnp.mean((ns - mn) ** 2, axis=0, keepdims=True)
            sq = gamma * jax.lax.rsqrt(vq + BN_EPS)  # fused scale
            sn = gamma * jax.lax.rsqrt(vn + BN_EPS)
            scale = jnp.where(is_q, sq, sn)          # row-masked select (VALU only)
            shift = jnp.where(is_q, beta - mq * sq, beta - mn * sn)
            ahat = cat * scale + shift

            # ONE matmul + ONE tanh for both groups.  Padded activation columns
            # stay exactly 0 (zero w rows/cols, zero bias, tanh(0)=0).
            h = jnp.dot(ahat, w_ref[...], preferred_element_type=jnp.float32)
            cat = jnp.tanh(h + bias_ref[...])

        x = cat[:B]                                  # (B, W_last); cols >= d_last are 0
        xn = cat[B:]                                 # (N, W_last)

        # ---- NONA (euclidean): sim = -||x_i - xn_j||_2, softmax over neighbors ----
        # Fold ||xn_j||^2 into the cross matmul through the spare zero column
        # d_last:  x_ext[:, d_last] = 1,  xn_ext[:, d_last] = -0.5 * ||xn_j||^2,
        # so cross_ij = x_i . xn_j - 0.5 ||xn_j||^2  (no transpose, no extra add).
        col = jax.lax.broadcasted_iota(jnp.int32, (1, cat.shape[1]), 1)
        x2 = jnp.sum(x * x, axis=1, keepdims=True)       # (B, 1)
        xn2 = jnp.sum(xn * xn, axis=1, keepdims=True)    # (N, 1)
        x_ext = jnp.where(col == d_last, 1.0, x)
        xn_ext = jnp.where(col == d_last, -0.5 * xn2, xn)
        cross = jax.lax.dot_general(                     # contract last dims: no .T copy
            x_ext, xn_ext, dimension_numbers=(((1,), (1,)), ((), ())),
            preferred_element_type=jnp.float32)          # (B, N)
        d2 = jnp.maximum(x2 - 2.0 * cross, 0.0)
        sim = -jnp.sqrt(d2)                              # -cdist(x, x_n, p=2)

        # Softmax over the neighbor axis.  sim <= 0, and because the extractor
        # ends in tanh, sim >= -2*sqrt(d_last) > -80: exp() cannot overflow nor
        # fully underflow, so the max-subtraction pass is skipped (clamp guards
        # pathological inputs at no measurable cost).
        sim = jnp.maximum(sim, -80.0)
        e = jnp.exp(sim)
        denom = jnp.sum(e, axis=1, keepdims=True)
        # EUP approximate reciprocal + one Newton step (f32 accuracy, no VALU divide).
        r = pl.reciprocal(denom, approx=True)
        r = r * (2.0 - denom * r)
        p = e * r

        out = jnp.dot(p, y_ref[...], preferred_element_type=jnp.float32)  # (B, C)
        o_ref[...] = jnp.clip(out, 0.0, 1.0)             # torch.clip(..., 0, 1) ('binary')
    return kernel


# ---------------------------------------------------------------------------
# Host wrapper: natural-shape inputs, single pallas_call, nothing else.
# ---------------------------------------------------------------------------
def nona_nn_forward(x, x_n, y_n, padded_params, *, d_last):
    n_layers = len(padded_params) // 4
    B, D_in = x.shape
    N = x_n.shape[0]
    C = y_n.shape[1]

    # Advisory cost estimate so XLA can schedule/overlap this tiny custom call.
    flops = 0
    trans = 0
    for i in range(n_layers):
        kin, kout = padded_params[4 * i + 2].shape
        flops += 2 * (B + N) * kin * kout            # fused (x || x_n) matmul
        trans += (B + N) * kout                      # tanh
    w_last_out = padded_params[4 * (n_layers - 1) + 2].shape[1]
    flops += 2 * B * N * w_last_out + 2 * B * N * C  # cross matmul + p @ y
    trans += B * N                                   # exp
    nbytes = 4 * (x.size + x_n.size + y_n.size
                  + sum(int(p.size) for p in padded_params) + B * C)
    cost = pl.CostEstimate(flops=int(flops), transcendentals=int(trans),
                           bytes_accessed=int(nbytes))

    vmem = pl.BlockSpec(memory_space=pltpu.MemorySpace.VMEM)
    return pl.pallas_call(
        make_fused_kernel(n_layers, B, N, d_last),
        out_shape=jax.ShapeDtypeStruct((B, C), jnp.float32),
        in_specs=[vmem] * (3 + len(padded_params)),
        out_specs=vmem,
        scratch_shapes=[pltpu.VMEM((B + N, D_in), jnp.float32)],
        cost_estimate=cost,
    )(x, x_n, y_n, *padded_params)


# ---------------------------------------------------------------------------
# Pure-JAX reference for correctness checking (uses the natural, unpadded params).
# ---------------------------------------------------------------------------
def nona_nn_reference(x, x_n, y_n, params):
    def bn(a, g, b):
        m = a.mean(0, keepdims=True)
        v = ((a - m) ** 2).mean(0, keepdims=True)
        return (a - m) / jnp.sqrt(v + BN_EPS) * g + b

    for (gamma, beta, w, b) in params:
        x = jnp.tanh(bn(x, gamma, beta) @ w + b)
        x_n = jnp.tanh(bn(x_n, gamma, beta) @ w + b)
    d2 = (jnp.sum(x * x, 1, keepdims=True)
          + jnp.sum(x_n * x_n, 1)[None, :]
          - 2.0 * x @ x_n.T)
    sim = -jnp.sqrt(jnp.maximum(d2, 0.0))
    p = jax.nn.softmax(sim, axis=1)
    return jnp.clip(p @ y_n, 0.0, 1.0)


if __name__ == "__main__":
    key = jax.random.PRNGKey(0)

    # Small shapes consistent with the module: batch=8 queries, 16 neighbors,
    # input_size=16, hl_sizes=[32, 16], binary labels.
    B, N, D_IN = 8, 16, 16
    HL_SIZES = [32, 16]

    k_x, k_xn, k_y, k_w = jax.random.split(key, 4)
    x = jax.random.normal(k_x, (B, D_IN), dtype=jnp.float32)
    x_n = jax.random.normal(k_xn, (N, D_IN), dtype=jnp.float32)
    y_n = jax.random.bernoulli(k_y, 0.5, (N, 1)).astype(jnp.float32)  # binary labels

    # Deterministic parameter init (PyTorch-style: Linear ~ U(-1/sqrt(fan_in), 1/sqrt(fan_in)),
    # BatchNorm1d gamma=1 / beta=0).
    params = []
    dims = [D_IN] + HL_SIZES
    wkeys = jax.random.split(k_w, len(dims) - 1)
    for i in range(len(dims) - 1):
        din, dout = dims[i], dims[i + 1]
        kw, kb = jax.random.split(wkeys[i])
        bound = 1.0 / jnp.sqrt(din)
        w = jax.random.uniform(kw, (din, dout), jnp.float32, -bound, bound)
        b = jax.random.uniform(kb, (1, dout), jnp.float32, -bound, bound)
        gamma = jnp.ones((1, din), jnp.float32)
        beta = jnp.zeros((1, din), jnp.float32)
        params.append((gamma, beta, w, b))

    # ONE-TIME parameter prep (hoisted out of the per-call path).
    padded_params, d_last = prepare_params(params)

    fwd = jax.jit(nona_nn_forward, static_argnames=("d_last",))
    out = jax.block_until_ready(fwd(x, x_n, y_n, padded_params, d_last=d_last))
    ref = jax.block_until_ready(nona_nn_reference(x, x_n, y_n, params))

    assert out.shape == (B, 1)
    assert jnp.allclose(out, ref, atol=1e-5, rtol=1e-5), (out, ref)
    print("KERNEL_OK")
</pallas_src>

<mosaic_0001>
module attributes {stable_mosaic.version = 11 : i64} {
  func.func @kernel(%arg0: memref<8x16xf32, #tpu.memory_space<vmem>>, %arg1: memref<16x16xf32, #tpu.memory_space<vmem>>, %arg2: memref<16x1xf32, #tpu.memory_space<vmem>>, %arg3: memref<1x16xf32, #tpu.memory_space<vmem>>, %arg4: memref<1x16xf32, #tpu.memory_space<vmem>>, %arg5: memref<16x128xf32, #tpu.memory_space<vmem>>, %arg6: memref<1x128xf32, #tpu.memory_space<vmem>>, %arg7: memref<1x128xf32, #tpu.memory_space<vmem>>, %arg8: memref<1x128xf32, #tpu.memory_space<vmem>>, %arg9: memref<128x128xf32, #tpu.memory_space<vmem>>, %arg10: memref<1x128xf32, #tpu.memory_space<vmem>>, %arg11: memref<8x1xf32, #tpu.memory_space<vmem>>, %arg12: memref<24x16xf32, #tpu.memory_space<vmem>>) attributes {dimension_semantics = [], scalar_prefetch = 0 : i64, scratch_operands = 1 : i64, tpu.core_type = #tpu.core_type<tc>} {
    %c0 = arith.constant 0 : index
    %c0_0 = arith.constant 0 : index
    %0 = vector.load %arg0[%c0, %c0_0] : memref<8x16xf32, #tpu.memory_space<vmem>>, vector<8x16xf32>
    %c0_1 = arith.constant 0 : index
    %c0_2 = arith.constant 0 : index
    %1 = vector.load %arg12[%c0_1, %c0_2] : memref<24x16xf32, #tpu.memory_space<vmem>>, vector<8x16xf32>
    tpu.vector_store %arg12[%c0_1, %c0_2], %0 {strides = array<i32>} : memref<24x16xf32, #tpu.memory_space<vmem>>, vector<8x16xf32>,
    %c0_3 = arith.constant 0 : index
    %c0_4 = arith.constant 0 : index
    %2 = vector.load %arg1[%c0_3, %c0_4] : memref<16x16xf32, #tpu.memory_space<vmem>>, vector<16x16xf32>
    %c8 = arith.constant 8 : index
    %c0_5 = arith.constant 0 : index
    %3 = vector.load %arg12[%c8, %c0_5] : memref<24x16xf32, #tpu.memory_space<vmem>>, vector<16x16xf32>
    tpu.vector_store %arg12[%c8, %c0_5], %2 {strides = array<i32>} : memref<24x16xf32, #tpu.memory_space<vmem>>, vector<16x16xf32>,
    %c0_6 = arith.constant 0 : index
    %c0_7 = arith.constant 0 : index
    %4 = vector.load %arg12[%c0_6, %c0_7] : memref<24x16xf32, #tpu.memory_space<vmem>>, vector<24x16xf32>
    %5 = tpu.iota {dimensions = array<i32: 0>} : vector<24x1xi32>
    %c8_i32 = arith.constant 8 : i32
    %6 = vector.broadcast %c8_i32 : i32 to vector<24x1xi32>
    %7 = arith.cmpi slt, %5, %6 : vector<24x1xi32>
    %c0_8 = arith.constant 0 : index
    %c0_9 = arith.constant 0 : index
    %8 = vector.load %arg3[%c0_8, %c0_9] : memref<1x16xf32, #tpu.memory_space<vmem>>, vector<1x16xf32>
    %c0_10 = arith.constant 0 : index
    %c0_11 = arith.constant 0 : index
    %9 = vector.load %arg4[%c0_10, %c0_11] : memref<1x16xf32, #tpu.memory_space<vmem>>, vector<1x16xf32>
    %10 = vector.extract_strided_slice %4 {offsets = [0, 0], sizes = [8, 16], strides = [1, 1]} : vector<24x16xf32> to vector<8x16xf32>
    %11 = vector.extract_strided_slice %4 {offsets = [8, 0], sizes = [16, 16], strides = [1, 1]} : vector<24x16xf32> to vector<16x16xf32>
    %cst = arith.constant dense<0.000000e+00> : vector<16xf32>
    %12 = vector.multi_reduction <add>, %10, %cst [0] : vector<8x16xf32> to vector<16xf32>
    %13 = vector.shape_cast %12 : vector<16xf32> to vector<1x16xf32>
    %cst_12 = arith.constant 8.000000e+00 : f32
    %14 = vector.broadcast %cst_12 : f32 to vector<1x16xf32>
    %15 = arith.divf %13, %14 : vector<1x16xf32>
    %16 = vector.broadcast %15 : vector<1x16xf32> to vector<8x16xf32>
    %17 = arith.subf %10, %16 : vector<8x16xf32>
    %18 = arith.mulf %17, %17 : vector<8x16xf32>
    %cst_13 = arith.constant dense<0.000000e+00> : vector<16xf32>
    %19 = vector.multi_reduction <add>, %18, %cst_13 [0] : vector<8x16xf32> to vector<16xf32>
    %20 = vector.shape_cast %19 : vector<16xf32> to vector<1x16xf32>
    %cst_14 = arith.constant 8.000000e+00 : f32
    %21 = vector.broadcast %cst_14 : f32 to vector<1x16xf32>
    %22 = arith.divf %20, %21 : vector<1x16xf32>
    %cst_15 = arith.constant dense<0.000000e+00> : vector<16xf32>
    %23 = vector.multi_reduction <add>, %11, %cst_15 [0] : vector<16x16xf32> to vector<16xf32>
    %24 = vector.shape_cast %23 : vector<16xf32> to vector<1x16xf32>
    %cst_16 = arith.constant 1.600000e+01 : f32
    %25 = vector.broadcast %cst_16 : f32 to vector<1x16xf32>
    %26 = arith.divf %24, %25 : vector<1x16xf32>
    %27 = vector.broadcast %26 : vector<1x16xf32> to vector<16x16xf32>
    %28 = arith.subf %11, %27 : vector<16x16xf32>
    %29 = arith.mulf %28, %28 : vector<16x16xf32>
    %cst_17 = arith.constant dense<0.000000e+00> : vector<16xf32>
    %30 = vector.multi_reduction <add>, %29, %cst_17 [0] : vector<16x16xf32> to vector<16xf32>
    %31 = vector.shape_cast %30 : vector<16xf32> to vector<1x16xf32>
    %cst_18 = arith.constant 1.600000e+01 : f32
    %32 = vector.broadcast %cst_18 : f32 to vector<1x16xf32>
    %33 = arith.divf %31, %32 : vector<1x16xf32>
    %cst_19 = arith.constant 9.99999974E-6 : f32
    %34 = vector.broadcast %cst_19 : f32 to vector<1x16xf32>
    %35 = arith.addf %22, %34 : vector<1x16xf32>
    %36 = math.rsqrt %35 : vector<1x16xf32>
    %37 = arith.mulf %8, %36 : vector<1x16xf32>
    %cst_20 = arith.constant 9.99999974E-6 : f32
    %38 = vector.broadcast %cst_20 : f32 to vector<1x16xf32>
    %39 = arith.addf %33, %38 : vector<1x16xf32>
    %40 = math.rsqrt %39 : vector<1x16xf32>
    %41 = arith.mulf %8, %40 : vector<1x16xf32>
    %42 = vector.shape_cast %7 : vector<24x1xi1> to vector<24x1xi1>
    %43 = vector.broadcast %42 : vector<24x1xi1> to vector<24x16xi1>
    %44 = vector.shape_cast %37 : vector<1x16xf32> to vector<1x16xf32>
    %45 = vector.broadcast %44 : vector<1x16xf32> to vector<24x16xf32>
    %46 = vector.shape_cast %41 : vector<1x16xf32> to vector<1x16xf32>
    %47 = vector.broadcast %46 : vector<1x16xf32> to vector<24x16xf32>
    %48 = arith.select %43, %45, %47 : vector<24x16xi1>, vector<24x16xf32>
    %49 = arith.mulf %15, %37 : vector<1x16xf32>
    %50 = arith.subf %9, %49 : vector<1x16xf32>
    %51 = arith.mulf %26, %41 : vector<1x16xf32>
    %52 = arith.subf %9, %51 : vector<1x16xf32>
    %53 = vector.shape_cast %7 : vector<24x1xi1> to vector<24x1xi1>
    %54 = vector.broadcast %53 : vector<24x1xi1> to vector<24x16xi1>
    %55 = vector.shape_cast %50 : vector<1x16xf32> to vector<1x16xf32>
    %56 = vector.broadcast %55 : vector<1x16xf32> to vector<24x16xf32>
    %57 = vector.shape_cast %52 : vector<1x16xf32> to vector<1x16xf32>
    %58 = vector.broadcast %57 : vector<1x16xf32> to vector<24x16xf32>
    %59 = arith.select %54, %56, %58 : vector<24x16xi1>, vector<24x16xf32>
    %60 = arith.mulf %4, %48 : vector<24x16xf32>
    %61 = arith.addf %60, %59 : vector<24x16xf32>
    %c0_21 = arith.constant 0 : index
    %c0_22 = arith.constant 0 : index
    %62 = vector.load %arg5[%c0_21, %c0_22] : memref<16x128xf32, #tpu.memory_space<vmem>>, vector<16x128xf32>
    %cst_23 = arith.constant dense<0.000000e+00> : vector<24x128xf32>
    %63 = tpu.matmul %61, %62, %cst_23 {dimension_numbers = #tpu.dot_dimension_numbers<[1], [0], [0], [1], [0, 0, 1, 1], [], []>} : vector<24x16xf32>, vector<16x128xf32>, vector<24x128xf32> -> vector<24x128xf32>
    %c0_24 = arith.constant 0 : index
    %c0_25 = arith.constant 0 : index
    %64 = vector.load %arg6[%c0_24, %c0_25] : memref<1x128xf32, #tpu.memory_space<vmem>>, vector<1x128xf32>
    %65 = vector.broadcast %64 : vector<1x128xf32> to vector<24x128xf32>
    %66 = arith.addf %63, %65 : vector<24x128xf32>
    %67 = math.tanh %66 : vector<24x128xf32>
    %c0_26 = arith.constant 0 : index
    %c0_27 = arith.constant 0 : index
    %68 = vector.load %arg7[%c0_26, %c0_27] : memref<1x128xf32, #tpu.memory_space<vmem>>, vector<1x128xf32>
    %c0_28 = arith.constant 0 : index
    %c0_29 = arith.constant 0 : index
    %69 = vector.load %arg8[%c0_28, %c0_29] : memref<1x128xf32, #tpu.memory_space<vmem>>, vector<1x128xf32>
    %70 = vector.extract_strided_slice %67 {offsets = [0, 0], sizes = [8, 128], strides = [1, 1]} : vector<24x128xf32> to vector<8x128xf32>
    %71 = vector.extract_strided_slice %67 {offsets = [8, 0], sizes = [16, 128], strides = [1, 1]} : vector<24x128xf32> to vector<16x128xf32>
    %cst_30 = arith.constant dense<0.000000e+00> : vector<128xf32>
    %72 = vector.multi_reduction <add>, %70, %cst_30 [0] : vector<8x128xf32> to vector<128xf32>
    %73 = vector.shape_cast %72 : vector<128xf32> to vector<1x128xf32>
    %cst_31 = arith.constant 8.000000e+00 : f32
    %74 = vector.broadcast %cst_31 : f32 to vector<1x128xf32>
    %75 = arith.divf %73, %74 : vector<1x128xf32>
    %76 = vector.broadcast %75 : vector<1x128xf32> to vector<8x128xf32>
    %77 = arith.subf %70, %76 : vector<8x128xf32>
    %78 = arith.mulf %77, %77 : vector<8x128xf32>
    %cst_32 = arith.constant dense<0.000000e+00> : vector<128xf32>
    %79 = vector.multi_reduction <add>, %78, %cst_32 [0] : vector<8x128xf32> to vector<128xf32>
    %80 = vector.shape_cast %79 : vector<128xf32> to vector<1x128xf32>
    %cst_33 = arith.constant 8.000000e+00 : f32
    %81 = vector.broadcast %cst_33 : f32 to vector<1x128xf32>
    %82 = arith.divf %80, %81 : vector<1x128xf32>
    %cst_34 = arith.constant dense<0.000000e+00> : vector<128xf32>
    %83 = vector.multi_reduction <add>, %71, %cst_34 [0] : vector<16x128xf32> to vector<128xf32>
    %84 = vector.shape_cast %83 : vector<128xf32> to vector<1x128xf32>
    %cst_35 = arith.constant 1.600000e+01 : f32
    %85 = vector.broadcast %cst_35 : f32 to vector<1x128xf32>
    %86 = arith.divf %84, %85 : vector<1x128xf32>
    %87 = vector.broadcast %86 : vector<1x128xf32> to vector<16x128xf32>
    %88 = arith.subf %71, %87 : vector<16x128xf32>
    %89 = arith.mulf %88, %88 : vector<16x128xf32>
    %cst_36 = arith.constant dense<0.000000e+00> : vector<128xf32>
    %90 = vector.multi_reduction <add>, %89, %cst_36 [0] : vector<16x128xf32> to vector<128xf32>
    %91 = vector.shape_cast %90 : vector<128xf32> to vector<1x128xf32>
    %cst_37 = arith.constant 1.600000e+01 : f32
    %92 = vector.broadcast %cst_37 : f32 to vector<1x128xf32>
    %93 = arith.divf %91, %92 : vector<1x128xf32>
    %cst_38 = arith.constant 9.99999974E-6 : f32
    %94 = vector.broadcast %cst_38 : f32 to vector<1x128xf32>
    %95 = arith.addf %82, %94 : vector<1x128xf32>
    %96 = math.rsqrt %95 : vector<1x128xf32>
    %97 = arith.mulf %68, %96 : vector<1x128xf32>
    %cst_39 = arith.constant 9.99999974E-6 : f32
    %98 = vector.broadcast %cst_39 : f32 to vector<1x128xf32>
    %99 = arith.addf %93, %98 : vector<1x128xf32>
    %100 = math.rsqrt %99 : vector<1x128xf32>
    %101 = arith.mulf %68, %100 : vector<1x128xf32>
    %102 = vector.shape_cast %7 : vector<24x1xi1> to vector<24x1xi1>
    %103 = vector.broadcast %102 : vector<24x1xi1> to vector<24x128xi1>
    %104 = vector.shape_cast %97 : vector<1x128xf32> to vector<1x128xf32>
    %105 = vector.broadcast %104 : vector<1x128xf32> to vector<24x128xf32>
    %106 = vector.shape_cast %101 : vector<1x128xf32> to vector<1x128xf32>
    %107 = vector.broadcast %106 : vector<1x128xf32> to vector<24x128xf32>
    %108 = arith.select %103, %105, %107 : vector<24x128xi1>, vector<24x128xf32>
    %109 = arith.mulf %75, %97 : vector<1x128xf32>
    %110 = arith.subf %69, %109 : vector<1x128xf32>
    %111 = arith.mulf %86, %101 : vector<1x128xf32>
    %112 = arith.subf %69, %111 : vector<1x128xf32>
    %113 = vector.shape_cast %7 : vector<24x1xi1> to vector<24x1xi1>
    %114 = vector.broadcast %113 : vector<24x1xi1> to vector<24x128xi1>
    %115 = vector.shape_cast %110 : vector<1x128xf32> to vector<1x128xf32>
    %116 = vector.broadcast %115 : vector<1x128xf32> to vector<24x128xf32>
    %117 = vector.shape_cast %112 : vector<1x128xf32> to vector<1x128xf32>
    %118 = vector.broadcast %117 : vector<1x128xf32> to vector<24x128xf32>
    %119 = arith.select %114, %116, %118 : vector<24x128xi1>, vector<24x128xf32>
    %120 = arith.mulf %67, %108 : vector<24x128xf32>
    %121 = arith.addf %120, %119 : vector<24x128xf32>
    %c0_40 = arith.constant 0 : index
    %c0_41 = arith.constant 0 : index
    %122 = vector.load %arg9[%c0_40, %c0_41] : memref<128x128xf32, #tpu.memory_space<vmem>>, vector<128x128xf32>
    %cst_42 = arith.constant dense<0.000000e+00> : vector<24x128xf32>
    %123 = tpu.matmul %121, %122, %cst_42 {dimension_numbers = #tpu.dot_dimension_numbers<[1], [0], [0], [1], [0, 0, 1, 1], [], []>} : vector<24x128xf32>, vector<128x128xf32>, vector<24x128xf32> -> vector<24x128xf32>
    %c0_43 = arith.constant 0 : index
    %c0_44 = arith.constant 0 : index
    %124 = vector.load %arg10[%c0_43, %c0_44] : memref<1x128xf32, #tpu.memory_space<vmem>>, vector<1x128xf32>
    %125 = vector.broadcast %124 : vector<1x128xf32> to vector<24x128xf32>
    %126 = arith.addf %123, %125 : vector<24x128xf32>
    %127 = math.tanh %126 : vector<24x128xf32>
    %128 = vector.extract_strided_slice %127 {offsets = [0, 0], sizes = [8, 128], strides = [1, 1]} : vector<24x128xf32> to vector<8x128xf32>
    %129 = vector.extract_strided_slice %127 {offsets = [8, 0], sizes = [16, 128], strides = [1, 1]} : vector<24x128xf32> to vector<16x128xf32>
    %130 = tpu.iota {dimensions = array<i32: 1>} : vector<1x128xi32>
    %131 = arith.mulf %128, %128 : vector<8x128xf32>
    %cst_45 = arith.constant dense<0.000000e+00> : vector<8xf32>
    %132 = vector.multi_reduction <add>, %131, %cst_45 [1] : vector<8x128xf32> to vector<8xf32>
    %133 = vector.shape_cast %132 : vector<8xf32> to vector<8x1xf32>
    %134 = arith.mulf %129, %129 : vector<16x128xf32>
    %cst_46 = arith.constant dense<0.000000e+00> : vector<16xf32>
    %135 = vector.multi_reduction <add>, %134, %cst_46 [1] : vector<16x128xf32> to vector<16xf32>
    %136 = vector.shape_cast %135 : vector<16xf32> to vector<16x1xf32>
    %c16_i32 = arith.constant 16 : i32
    %137 = vector.broadcast %c16_i32 : i32 to vector<1x128xi32>
    %138 = arith.cmpi eq, %130, %137 : vector<1x128xi32>
    %cst_47 = arith.constant 1.000000e+00 : f32
    %139 = vector.shape_cast %138 : vector<1x128xi1> to vector<1x128xi1>
    %140 = vector.broadcast %139 : vector<1x128xi1> to vector<8x128xi1>
    %141 = vector.broadcast %cst_47 : f32 to vector<8x128xf32>
    %142 = arith.select %140, %141, %128 : vector<8x128xi1>, vector<8x128xf32>
    %c16_i32_48 = arith.constant 16 : i32
    %143 = vector.broadcast %c16_i32_48 : i32 to vector<1x128xi32>
    %144 = arith.cmpi eq, %130, %143 : vector<1x128xi32>
    %cst_49 = arith.constant -5.000000e-01 : f32
    %145 = vector.broadcast %cst_49 : f32 to vector<16x1xf32>
    %146 = arith.mulf %145, %136 : vector<16x1xf32>
    %147 = vector.shape_cast %144 : vector<1x128xi1> to vector<1x128xi1>
    %148 = vector.broadcast %147 : vector<1x128xi1> to vector<16x128xi1>
    %149 = vector.shape_cast %146 : vector<16x1xf32> to vector<16x1xf32>
    %150 = vector.broadcast %149 : vector<16x1xf32> to vector<16x128xf32>
    %151 = arith.select %148, %150, %129 : vector<16x128xi1>, vector<16x128xf32>
    %cst_50 = arith.constant dense<0.000000e+00> : vector<8x16xf32>
    %152 = tpu.matmul %142, %151, %cst_50 {dimension_numbers = #tpu.dot_dimension_numbers<[1], [1], [0], [0], [0, 0, 1, 0], [], []>} : vector<8x128xf32>, vector<16x128xf32>, vector<8x16xf32> -> vector<8x16xf32>
    %cst_51 = arith.constant 2.000000e+00 : f32
    %153 = vector.broadcast %cst_51 : f32 to vector<8x16xf32>
    %154 = arith.mulf %153, %152 : vector<8x16xf32>
    %155 = vector.broadcast %133 : vector<8x1xf32> to vector<8x16xf32>
    %156 = arith.subf %155, %154 : vector<8x16xf32>
    %cst_52 = arith.constant 0.000000e+00 : f32
    %157 = vector.broadcast %cst_52 : f32 to vector<8x16xf32>
    %158 = arith.maximumf %156, %157 : vector<8x16xf32>
    %159 = math.sqrt %158 : vector<8x16xf32>
    %cst_53 = arith.constant 0.000000e+00 : f32
    %160 = vector.broadcast %cst_53 : f32 to vector<8x16xf32>
    %161 = arith.subf %160, %159 : vector<8x16xf32>
    %cst_54 = arith.constant -8.000000e+01 : f32
    %162 = vector.broadcast %cst_54 : f32 to vector<8x16xf32>
    %163 = arith.maximumf %161, %162 : vector<8x16xf32>
    %164 = math.exp %163 : vector<8x16xf32>
    %cst_55 = arith.constant dense<0.000000e+00> : vector<8xf32>
    %165 = vector.multi_reduction <add>, %164, %cst_55 [1] : vector<8x16xf32> to vector<8xf32>
    %166 = vector.shape_cast %165 : vector<8xf32> to vector<8x1xf32>
    %167 = tpu.reciprocal %166 {approx = true} : vector<8x1xf32> -> vector<8x1xf32>
    %168 = arith.mulf %166, %167 : vector<8x1xf32>
    %cst_56 = arith.constant 2.000000e+00 : f32
    %169 = vector.broadcast %cst_56 : f32 to vector<8x1xf32>
    %170 = arith.subf %169, %168 : vector<8x1xf32>
    %171 = arith.mulf %167, %170 : vector<8x1xf32>
    %172 = vector.broadcast %171 : vector<8x1xf32> to vector<8x16xf32>
    %173 = arith.mulf %164, %172 : vector<8x16xf32>
    %c0_57 = arith.constant 0 : index
    %c0_58 = arith.constant 0 : index
    %174 = vector.load %arg2[%c0_57, %c0_58] : memref<16x1xf32, #tpu.memory_space<vmem>>, vector<16x1xf32>
    %cst_59 = arith.constant dense<0.000000e+00> : vector<8x1xf32>
    %175 = tpu.matmul %173, %174, %cst_59 {dimension_numbers = #tpu.dot_dimension_numbers<[1], [0], [0], [1], [0, 0, 1, 1], [], []>} : vector<8x16xf32>, vector<16x1xf32>, vector<8x1xf32> -> vector<8x1xf32>
    %cst_60 = arith.constant 0.000000e+00 : f32
    %cst_61 = arith.constant 1.000000e+00 : f32
    %176 = vector.broadcast %cst_60 : f32 to vector<8x1xf32>
    %177 = arith.maximumf %176, %175 : vector<8x1xf32>
    %178 = vector.broadcast %cst_61 : f32 to vector<8x1xf32>
    %179 = arith.minimumf %178, %177 : vector<8x1xf32>
    %c0_62 = arith.constant 0 : index
    %c0_63 = arith.constant 0 : index
    %180 = vector.load %arg11[%c0_62, %c0_63] : memref<8x1xf32, #tpu.memory_space<vmem>>, vector<8x1xf32>
    tpu.vector_store %arg11[%c0_62, %c0_63], %179 {strides = array<i32>} : memref<8x1xf32, #tpu.memory_space<vmem>>, vector<8x1xf32>,
    return
  }
}

</mosaic_0001>

<bundles_post_ra>
// kernel: nona_nn_forward.1
= control target key start
LH: loop header
LB: loop body
LE: loop exit
PB: predicated region body
PF: predicated region fallthrough
CT: control target
= control target key end

     0   :  { %16 = vsyncpa [#allocation4], 0  ;;  %s785_s0 = inlined_call_operand.hbm [shape: f32[8,16], index: 0, kind: input, shape index: {}]   ;;  %s786_s1 = inlined_call_operand.vmem [shape: f32[16,16], index: 1, kind: input, shape index: {}]   ;;  %s787_s2 = inlined_call_operand.vmem [shape: f32[16,1], index: 2, kind: input, shape index: {}]   ;;  %s788_s3 = inlined_call_operand.vmem [shape: f32[1,16], index: 3, kind: input, shape index: {}]   ;;  %s789_s4 = inlined_call_operand.vmem [shape: f32[1,16], index: 4, kind: input, shape index: {}]   ;;  %s790_s5 = inlined_call_operand.hbm [shape: f32[16,128], index: 5, kind: input, shape index: {}]   ;;  %s791_s6 = inlined_call_operand.vmem [shape: f32[1,128], index: 6, kind: input, shape index: {}]   ;;  %s792_s7 = inlined_call_operand.vmem [shape: f32[1,128], index: 7, kind: input, shape index: {}]   ;;  %s793_s8 = inlined_call_operand.vmem [shape: f32[1,128], index: 8, kind: input, shape index: {}]   ;;  %s794_s9 = inlined_call_operand.hbm [shape: f32[128,128], index: 9, kind: input, shape index: {}]   ;;  %s795_s10 = inlined_call_operand.vmem [shape: f32[1,128], index: 10, kind: input, shape index: {}]   ;;  %s796_s11 = inlined_call_operand.vmem [shape: f32[8,1], index: 11, kind: output, shape index: {}]  }
   0x1   :  { %17 = vsyncpa [#allocation6], 0  ;;  %s41_s19 = sshll.u32 %s790_s5, 4  ;;  %s619_s20 = smov [#allocation5]   ;;  %s42_s19 = int_to_ptr.hbm [resolvable:$true] %s41_s19 }
   0x2   :  { %s43_s21 = sshll.u32 %s619_s20, 4  ;;  %s23_s24 = sshll.u32 %s785_s0, 4  ;;  %s44_s21 = int_to_ptr.vmem [resolvable:$true] %s43_s21  ;;  %s24_s24 = int_to_ptr.hbm [resolvable:$true] %s23_s24 }
   0x3   :  { %s620_s25 = smov 128   ;;  %s621_s26 = smov 8  }
   0x4   :  { %49 = dma.hbm_to_vmem [thread:$0]  %s42_s19, 256, %s44_s21, [#allocation6], %s620_s25, %s620_s25, %s621_s26  }
   0x5   :  { %s622_s27 = smov [#allocation3]   ;;  %s60_s12 = sshll.u32 %s794_s9, 4  ;;  %s61_s12 = int_to_ptr.hbm [resolvable:$true] %s60_s12 }
   0x6   :  { %s25_s28 = sshll.u32 %s622_s27, 4  ;;  %s623_s5 = smov [#allocation7]   ;;  %s26_s28 = int_to_ptr.vmem [resolvable:$true] %s25_s28 }
   0x7   :  { %28 = dma.hbm_to_vmem [thread:$0]  %s24_s24, 128, %s26_s28, [#allocation4]  }
   0x8   :  { %s62_s13 = sshll.u32 %s623_s5, 4  ;;  %s63_s13 = int_to_ptr.vmem [resolvable:$true] %s62_s13 }
   0x9   :  { %68 = dma.hbm_to_vmem [thread:$0]  %s61_s12, 2048, %s63_s13, [#allocation6], %s620_s25, %s620_s25, %s621_s26  }
   0xa   :  { %615 = dma.done.wait [#allocation4], 128  }
   0xb   :  { %616 = vsyncadd [#allocation4], 4294967168 }
   0xc   :  { %617 = dma.done.wait [#allocation6], 2304  }
   0xd   :  { %618 = vsyncadd [#allocation6], 4294964992  ;;  %v624_v0 = vmov 8.0   ;;  %vm84_vm0 = vcmask 130048   ;;  %v625_v1 = vmov 16.0   ;;  %v217_v3 = vld [vmem:[#allocation5 + $0x8] sm:$0xff] }
   0xe   :  { %513 = vrcp.f32 %v624_v0  ;;  %v216_v4 = vld [vmem:[#allocation5] sm:$0xff]  ;;  %v83_v5 = vld [vmem:[#allocation3] sm:$0xff]  ;;  %245 = vmatpush.msra.mxu0 %v217_v3  ;;  %v87_v7 = vld [vmem:[%s786_s1 + $0x8] sm:$0xff] }
   0xf   :  { %515 = vrcp.f32 %v625_v1  ;;  %85 = vst.msk [vmem:[#allocation2] sm:$0xff] %vm84_vm0, %v83_v5  ;;  %v86_v6 = vld [vmem:[%s786_s1] sm:$0xff] }
  0x10   :  { %246 = vmatpush.msra.mxu0 %v216_v4  ;;  %88 = vst.msk [vmem:[#allocation2 + $0x8] sm:$0xff] %vm84_vm0, %v86_v6 }
  0x11   :  { %89 = vst.msk [vmem:[#allocation2 + $0x10] sm:$0xff] %vm84_vm0, %v87_v7 }
  0x14   :  { %v514_v2 = vpop.eup %513 }
  0x15   :  { %v110_v8 = vmul.f32 8.0, %v514_v2  ;;  %v516_v9 = vpop.eup %515  ;;  %vm114_vm1 = vweird.f32 %v514_v2 }
  0x16   :  { %v704_v11 = vld [vmem:[#allocation2] sm:$0xff]  ;;  %v137_v12 = vmul.f32 16.0, %v516_v9  ;;  %vm141_vm2 = vweird.f32 %v516_v9 }
  0x17   :  { %v111_v10 = vsub.f32 1.0, %v110_v8  ;;  %v102_v13 = vsel %vm84_vm0, %v704_v11, 0.0  ;;  %v708_v15 = vld [vmem:[#allocation2 + $0x8] sm:$0xff] }
  0x18   :  { %v103_v14 = vrot.slane %v102_v13, 4  ;;  %v710_v17 = vld [vmem:[#allocation2 + $0x10] sm:$0xff]  ;;  %v127_v18 = vsel %vm84_vm0, %v708_v15, 0.0  ;;  %v138_v21 = vsub.f32 1.0, %v137_v12 }
  0x19   :  { %v112_v16 = vmul.f32 %v514_v2, %v111_v10  ;;  %v128_v20 = vsel %vm84_vm0, %v710_v17, 0.0 }
  0x1a   :  { %v104_v19 = vadd.f32 %v103_v14, %v102_v13  ;;  %v129_v22 = vadd.f32 %v128_v20, %v127_v18  ;;  %v139_v27 = vmul.f32 %v516_v9, %v138_v21  ;;  %v101_v18 = vld [vmem:[%s789_s4] sm:$0x1] }
  0x1b   :  { %v113_v24 = vadd.f32 %v514_v2, %v112_v16 }
  0x1c   :  { %v105_v23 = vrot.slane %v104_v19, 2  ;;  %v130_v25 = vrot.slane %v129_v22, 4  ;;  %v140_v33 = vadd.f32 %v516_v9, %v139_v27 }
  0x1d   :  { %v716_v30 = vsel %vm114_vm1, %v514_v2, %v113_v24 }
  0x1e   :  { %v106_v26 = vadd.f32 %v105_v23, %v104_v19  ;;  %v131_v28 = vadd.f32 %v130_v25, %v129_v22  ;;  %v720_v38 = vsel %vm141_vm2, %v516_v9, %v140_v33  ;;  %v100_v9 = vld [vmem:[%s788_s3] sm:$0x1] }
  0x20   :  { %v107_v29 = vrot.slane %v106_v26, 1  ;;  %v132_v31 = vrot.slane %v131_v28, 2 }
  0x22   :  { %v108_v32 = vadd.f32 %v107_v29, %v106_v26  ;;  %v133_v34 = vadd.f32 %v132_v31, %v131_v28 }
  0x24   :  { %v116_v35 = vmul.f32 %v716_v30, %v108_v32  ;;  %v134_v36 = vrot.slane %v133_v34, 1 }
  0x26   :  { %v117_v37 = vsub.f32 %v704_v11, %v116_v35  ;;  %v135_v39 = vadd.f32 %v134_v36, %v133_v34 }
  0x28   :  { %v118_v40 = vmul.f32 %v117_v37, %v117_v37  ;;  %v143_v41 = vmul.f32 %v720_v38, %v135_v39  ;;  %v364_v39 = vld [vmem:[#allocation7 + $0x70] sm:$0xff] }
  0x2a   :  { %v119_v42 = vsel %vm84_vm0, %v118_v40, 0.0  ;;  %v144_v44 = vsub.f32 %v708_v15, %v143_v41  ;;  %v145_v45 = vsub.f32 %v710_v17, %v143_v41  ;;  %v363_v40 = vld [vmem:[#allocation7 + $0x68] sm:$0xff] }
  0x2b   :  { %v120_v43 = vrot.slane %v119_v42, 4 }
  0x2c   :  { %v146_v47 = vmul.f32 %v144_v44, %v144_v44  ;;  %v147_v48 = vmul.f32 %v145_v45, %v145_v45  ;;  %v360_v45 = vld [vmem:[#allocation7 + $0x50] sm:$0xff] }
  0x2d   :  { %v121_v46 = vadd.f32 %v120_v43, %v119_v42  ;;  %v362_v42 = vld [vmem:[#allocation7 + $0x60] sm:$0xff]  ;;  %v361_v43 = vld [vmem:[#allocation7 + $0x58] sm:$0xff] }
  0x2e   :  { %v148_v50 = vsel %vm84_vm0, %v146_v47, 0.0  ;;  %v149_v51 = vsel %vm84_vm0, %v147_v48, 0.0  ;;  %v357_v48 = vld [vmem:[#allocation7 + $0x38] sm:$0xff] }
  0x2f   :  { %v122_v49 = vrot.slane %v121_v46, 2  ;;  %v150_v52 = vadd.f32 %v149_v51, %v148_v50  ;;  %v356_v50 = vld [vmem:[#allocation7 + $0x30] sm:$0xff] }
  0x31   :  { %v123_v53 = vadd.f32 %v122_v49, %v121_v46  ;;  %v151_v54 = vrot.slane %v150_v52, 4  ;;  %v358_v46 = vld [vmem:[#allocation7 + $0x40] sm:$0xff] }
  0x33   :  { %v124_v55 = vrot.slane %v123_v53, 1  ;;  %v152_v56 = vadd.f32 %v151_v54, %v150_v52  ;;  %v355_v52 = vld [vmem:[#allocation7 + $0x28] sm:$0xff] }
  0x35   :  { %v125_v57 = vadd.f32 %v124_v55, %v123_v53  ;;  %v153_v58 = vrot.slane %v152_v56, 2  ;;  %v354_v55 = vld [vmem:[#allocation7 + $0x20] sm:$0xff] }
  0x37   :  { %v126_v59 = vmul.f32 %v125_v57, %v716_v30  ;;  %v154_v60 = vadd.f32 %v153_v58, %v152_v56  ;;  %v353_v58 = vld [vmem:[#allocation7 + $0x18] sm:$0xff] }
  0x39   :  { %v158_v61 = vadd.f32 1e-05, %v126_v59  ;;  %v155_v62 = vrot.slane %v154_v60, 1 }
  0x3b   :  { %517 = vrsqrt.f32 %v158_v61  ;;  %v156_v63 = vadd.f32 %v155_v62, %v154_v60  ;;  %vm165_vm3 = vweird.f32 %v158_v61 }
  0x3d   :  { %v157_v0 = vmul.f32 %v156_v63, %v720_v38  ;;  %v351_v63 = vld [vmem:[#allocation7 + $0x8] sm:$0xff] }
  0x3f   :  { %v170_v1 = vadd.f32 1e-05, %v157_v0 }
  0x41   :  { %v518_v2 = vpop.eup %517  ;;  %519 = vrsqrt.f32 %v170_v1  ;;  %vm177_vm6 = vweird.f32 %v170_v1 }
  0x42   :  { %v160_v3 = vmul.f32 %v518_v2, %v158_v61  ;;  %vm166_vm4 = vweird.f32 %v518_v2  ;;  %v352_v61 = vld [vmem:[#allocation7 + $0x10] sm:$0xff] }
  0x43   :  { %vm167_vm5 = vmor %vm165_vm3, %vm166_vm4  ;;  %vm492_vm3 = vcmask 7168  }
  0x44   :  { %v161_v4 = vmul.f32 %v518_v2, %v160_v3 }
  0x46   :  { %v162_v5 = vmul.f32 0.5, %v161_v4 }
  0x47   :  { %v520_v6 = vpop.eup %519 }
  0x48   :  { %v163_v7 = vsub.f32 1.5, %v162_v5  ;;  %v172_v8 = vmul.f32 %v520_v6, %v170_v1  ;;  %vm178_vm7 = vweird.f32 %v520_v6  ;;  %v350_v1 = vld [vmem:[#allocation7] sm:$0xff] }
  0x49   :  { %vm179_vm8 = vmor %vm177_vm6, %vm178_vm7 }
  0x4a   :  { %v164_v10 = vmul.f32 %v518_v2, %v163_v7  ;;  %v173_v12 = vmul.f32 %v520_v6, %v172_v8 }
  0x4c   :  { %v168_v13 = vsel %vm167_vm5, %v518_v2, %v164_v10  ;;  %v174_v16 = vmul.f32 0.5, %v173_v12 }
  0x4d   :  { %v169_v14 = vmul.f32 %v168_v13, %v100_v9 }
  0x4e   :  { %v175_v21 = vsub.f32 1.5, %v174_v16 }
  0x4f   :  { %v189_v19 = vperm.slane %v169_v14, 0  ;;  %v197_v20 = vmul.f32 %v169_v14, %v116_v35 }
  0x50   :  { %v176_v24 = vmul.f32 %v520_v6, %v175_v21 }
  0x51   :  { %v198_v22 = vsub.f32 %v101_v18, %v197_v20  ;;  %v210_v23 = vmul.f32 %v189_v19, %v704_v11  ;;  %v365_v11 = vld [vmem:[#allocation7 + $0x78] sm:$0xff] }
  0x52   :  { %v180_v26 = vsel %vm179_vm8, %v520_v6, %v176_v24  ;;  %370 = vmatpush.msra.mxu1 %v365_v11 }
  0x53   :  { %v202_v25 = vperm.slane %v198_v22, 0  ;;  %v181_v27 = vmul.f32 %v180_v26, %v100_v9 }
  0x54   :  { %371 = vmatpush.msra.mxu1 %v364_v39 }
  0x55   :  { %v213_v28 = vadd.f32 %v210_v23, %v202_v25  ;;  %v192_v29 = vperm.slane %v181_v27, 0  ;;  %v199_v31 = vmul.f32 %v181_v27, %v143_v41  ;;  %v511_v41 = vld [vmem:[%s791_s6] ss:$0 sm:$0xff] }
  0x56   :  { %372 = vmatpush.msra.mxu1 %v363_v40 }
  0x57   :  { %500 = vmatmul.msk.f32.vlgmr.msra.gmra.mxu0 %vm84_vm0, %v213_v28  ;;  %v200_v32 = vsub.f32 %v101_v18, %v199_v31  ;;  %v211_v33 = vmul.f32 %v192_v29, %v708_v15  ;;  %v212_v35 = vmul.f32 %v192_v29, %v710_v17  ;;  %v359_v17 = vld [vmem:[#allocation7 + $0x48] sm:$0xff] }
  0x58   :  { %373 = vmatpush.msra.mxu1 %v362_v42  ;;  %v260_v42 = vld [vmem:[%s792_s7] sm:$0x1] }
  0x59   :  { %v205_v34 = vperm.slane %v200_v32, 0 }
  0x5a   :  { %374 = vmatpush.msra.mxu1 %v361_v43 }
  0x5b   :  { %v214_v36 = vadd.f32 %v211_v33, %v205_v34  ;;  %v215_v37 = vadd.f32 %v212_v35, %v205_v34 }
  0x5c   :  { %375 = vmatpush.msra.mxu1 %v360_v45 }
  0x5e   :  { %376 = vmatpush.msra.mxu1 %v359_v17 }
  0x5f   :  { %501 = vmatmul.msk.f32.gmra.mxu0 %vm84_vm0, %v214_v36 }
  0x60   :  { %377 = vmatpush.msra.mxu1 %v358_v46  ;;  %v261_v46 = vld [vmem:[%s793_s8] sm:$0x1] }
  0x62   :  { %378 = vmatpush.msra.mxu1 %v357_v48 }
  0x64   :  { %379 = vmatpush.msra.mxu1 %v356_v50 }
  0x66   :  { %380 = vmatpush.msra.mxu1 %v355_v52 }
  0x67   :  { %502 = vmatmul.msk.f32.gmra.mxu0 %vm84_vm0, %v215_v37 }
  0x68   :  { %381 = vmatpush.msra.mxu1 %v354_v55 }
  0x6a   :  { %382 = vmatpush.msra.mxu1 %v353_v58 }
  0x6c   :  { %383 = vmatpush.msra.mxu1 %v352_v61 }
  0x6e   :  { %384 = vmatpush.msra.mxu1 %v351_v63 }
  0x70   :  { %385 = vmatpush.msra.mxu1 %v350_v1 }
  0xd4   :  { %v248_v15 = vpop.f32.mrf.mxu0 }
  0xd5   :  { %v249_v44 = vadd.f32 %v511_v41, %v248_v15 }
  0xd7   :  { %521 = vtanh.f32 %v249_v44 }
  0xdc   :  { %v251_v47 = vpop.f32.mrf.mxu0 }
  0xdd   :  { %v745_v49 = vpop.eup %521  ;;  %v252_v54 = vadd.f32 %v511_v41, %v251_v47 }
  0xde   :  { %v262_v51 = vrot.slane %v745_v49, 4 }
  0xdf   :  { %523 = vtanh.f32 %v252_v54 }
  0xe0   :  { %v263_v53 = vadd.f32 %v745_v49, %v262_v51 }
  0xe2   :  { %v264_v56 = vrot.slane %v263_v53, 2 }
  0xe4   :  { %v254_v57 = vpop.f32.mrf.mxu0  ;;  %v265_v59 = vadd.f32 %v264_v56, %v263_v53 }
  0xe5   :  { %v255_v60 = vadd.f32 %v511_v41, %v254_v57  ;;  %v750_v3 = vpop.eup %523 }
  0xe6   :  { %v266_v62 = vrot.slane %v265_v59, 1 }
  0xe7   :  { %525 = vtanh.f32 %v255_v60 }
  0xe8   :  { %v267_v0 = vadd.f32 %v266_v62, %v265_v59 }
  0xea   :  { %v268_v2 = vmul.f32 %v267_v0, %v716_v30 }
  0xec   :  { %v269_v4 = vsub.f32 %v745_v49, %v268_v2 }
  0xed   :  { %v753_v5 = vpop.eup %525 }
  0xee   :  { %v278_v6 = vadd.f32 %v753_v5, %v750_v3  ;;  %v270_v7 = vmul.f32 %v269_v4, %v269_v4 }
  0xf0   :  { %v271_v8 = vrot.slane %v270_v7, 4  ;;  %v279_v9 = vrot.slane %v278_v6, 4 }
  0xf2   :  { %v272_v10 = vadd.f32 %v271_v8, %v270_v7  ;;  %v280_v12 = vadd.f32 %v279_v9, %v278_v6  ;;  %v512_v6 = vld [vmem:[%s795_s10] ss:$0 sm:$0xff] }
  0xf4   :  { %v273_v13 = vrot.slane %v272_v10, 2  ;;  %v281_v14 = vrot.slane %v280_v12, 2 }
  0xf6   :  { %v274_v16 = vadd.f32 %v273_v13, %v272_v10  ;;  %v282_v18 = vadd.f32 %v281_v14, %v280_v12 }
  0xf8   :  { %v275_v19 = vrot.slane %v274_v16, 1  ;;  %v283_v20 = vrot.slane %v282_v18, 1 }
  0xfa   :  { %v276_v21 = vadd.f32 %v275_v19, %v274_v16  ;;  %v284_v22 = vadd.f32 %v283_v20, %v282_v18  ;;  %v399_v20 = vlaneseq }
  0xfc   :  { %v277_v23 = vmul.f32 %v276_v21, %v716_v30  ;;  %v285_v24 = vmul.f32 %v284_v22, %v720_v38  ;;  %v400_v21 = vand.u32 127, %v399_v20 }
  0xfe   :  { %v298_v25 = vadd.f32 1e-05, %v277_v23  ;;  %v286_v26 = vsub.f32 %v750_v3, %v285_v24  ;;  %v287_v27 = vsub.f32 %v753_v5, %v285_v24  ;;  %vm410_vm15 = vcmp.eq.s32.totalorder %v400_v21, 16 }
 0x100   :  { %527 = vrsqrt.f32 %v298_v25  ;;  %v288_v28 = vmul.f32 %v286_v26, %v286_v26  ;;  %v289_v29 = vmul.f32 %v287_v27, %v287_v27  ;;  %vm305_vm10 = vweird.f32 %v298_v25 }
 0x102   :  { %v290_v31 = vadd.f32 %v289_v29, %v288_v28 }
 0x104   :  { %v291_v32 = vrot.slane %v290_v31, 4 }
 0x106   :  { %v528_v33 = vpop.eup %527  ;;  %v292_v34 = vadd.f32 %v291_v32, %v290_v31 }
 0x107   :  { %v300_v36 = vmul.f32 %v528_v33, %v298_v25  ;;  %vm306_vm9 = vweird.f32 %v528_v33 }
 0x108   :  { %v293_v35 = vrot.slane %v292_v34, 2  ;;  %vm307_vm11 = vmor %vm305_vm10, %vm306_vm9 }
 0x109   :  { %v301_v37 = vmul.f32 %v528_v33, %v300_v36 }
 0x10a   :  { %v294_v11 = vadd.f32 %v293_v35, %v292_v34 }
 0x10b   :  { %v302_v39 = vmul.f32 0.5, %v301_v37 }
 0x10c   :  { %v295_v30 = vrot.slane %v294_v11, 1 }
 0x10d   :  { %v303_v40 = vsub.f32 1.5, %v302_v39 }
 0x10e   :  { %v296_v41 = vadd.f32 %v295_v30, %v294_v11 }
 0x10f   :  { %v304_v15 = vmul.f32 %v528_v33, %v303_v40 }
 0x110   :  { %v297_v43 = vmul.f32 %v296_v41, %v720_v38 }
 0x111   :  { %v308_v44 = vsel %vm307_vm11, %v528_v33, %v304_v15 }
 0x112   :  { %v309_v45 = vmul.f32 %v308_v44, %v260_v42  ;;  %v310_v17 = vadd.f32 1e-05, %v297_v43 }
 0x114   :  { %v323_v47 = vperm.slane %v309_v45, 0  ;;  %v331_v48 = vmul.f32 %v309_v45, %v268_v2  ;;  %529 = vrsqrt.f32 %v310_v17  ;;  %vm317_vm13 = vweird.f32 %v310_v17 }
 0x116   :  { %v332_v50 = vsub.f32 %v261_v46, %v331_v48  ;;  %v344_v52 = vmul.f32 %v745_v49, %v323_v47  ;;  %v466_v47 = vld [vmem:[%s787_s2 + $0x8] sm:$0xff]  ;;  %v465_v48 = vld [vmem:[%s787_s2] sm:$0xff] }
 0x117   :  { %484 = vmatpush.msra.mxu3 %v466_v47 }
 0x118   :  { %v336_v51 = vperm.slane %v332_v50, 0 }
 0x119   :  { %485 = vmatpush.msra.mxu3 %v465_v48 }
 0x11a   :  { %v530_v53 = vpop.eup %529  ;;  %v347_v54 = vadd.f32 %v344_v52, %v336_v51 }
 0x11b   :  { %v312_v55 = vmul.f32 %v530_v53, %v310_v17  ;;  %vm318_vm12 = vweird.f32 %v530_v53 }
 0x11c   :  { %386 = vmatmul.f32.vlgmr.msra.gmra.mxu1 %v347_v54  ;;  %vm319_vm14 = vmor %vm317_vm13, %vm318_vm12 }
 0x11d   :  { %v313_v56 = vmul.f32 %v530_v53, %v312_v55 }
 0x11f   :  { %v314_v38 = vmul.f32 0.5, %v313_v56 }
 0x121   :  { %v315_v57 = vsub.f32 1.5, %v314_v38 }
 0x123   :  { %v316_v58 = vmul.f32 %v530_v53, %v315_v57 }
 0x125   :  { %v320_v59 = vsel %vm319_vm14, %v530_v53, %v316_v58 }
 0x126   :  { %v321_v60 = vmul.f32 %v320_v59, %v260_v42 }
 0x128   :  { %v326_v61 = vperm.slane %v321_v60, 0  ;;  %v333_v62 = vmul.f32 %v321_v60, %v285_v24 }
 0x12a   :  { %v334_v63 = vsub.f32 %v261_v46, %v333_v62  ;;  %v345_v1 = vmul.f32 %v750_v3, %v326_v61  ;;  %v346_v2 = vmul.f32 %v753_v5, %v326_v61 }
 0x12c   :  { %v339_v0 = vperm.slane %v334_v63, 0 }
 0x12e   :  { %v348_v49 = vadd.f32 %v345_v1, %v339_v0  ;;  %v349_v4 = vadd.f32 %v346_v2, %v339_v0 }
 0x130   :  { %389 = vmatmul.f32.gmra.mxu1 %v348_v49 }
 0x138   :  { %392 = vmatmul.f32.gmra.mxu1 %v349_v4 }
 0x199   :  { %v387_v7 = vpop.f32.mrf.mxu1 }
 0x19a   :  { %v388_v8 = vadd.f32 %v512_v6, %v387_v7 }
 0x19c   :  { %531 = vtanh.f32 %v388_v8 }
 0x1a2   :  { %v532_v9 = vpop.eup %531 }
 0x1a3   :  { %v401_v10 = vmul.f32 %v532_v9, %v532_v9  ;;  %v413_v28 = vsel %vm410_vm15, 1.0, %v532_v9 }
 0x1a5   :  { %402 = vadd.xlane.f32.xlu1 %v401_v10 }
 0x1ad   :  { %v390_v12 = vpop.f32.mrf.mxu1 }
 0x1ae   :  { %v391_v3 = vadd.f32 %v512_v6, %v390_v12 }
 0x1b5   :  { %v393_v13 = vpop.f32.mrf.mxu1 }
 0x1b6   :  { %v394_v14 = vadd.f32 %v512_v6, %v393_v13 }
 0x1b8   :  { %533 = vtanh.f32 %v394_v14 }
 0x1b9   :  { %535 = vtanh.f32 %v391_v3 }
 0x1be   :  { %v534_v16 = vpop.eup %533 }
 0x1bf   :  { %v405_v5 = vmul.f32 %v534_v16, %v534_v16  ;;  %v536_v18 = vpop.eup %535 }
 0x1c0   :  { %v404_v19 = vmul.f32 %v536_v18, %v536_v18 }
 0x1c1   :  { %408 = vadd.xlane.f32.xlu0 %v405_v5 }
 0x1c9   :  { %406 = vadd.xlane.f32.xlu0 %v404_v19 }
 0x218   :  { %v403_v32 = vpop.xlane.xlu1 %402 }
 0x234   :  { %v409_v22 = vpop.xlane.xlu0 %408 }
 0x235   :  { %v415_v23 = vmul.f32 -0.5, %v409_v22 }
 0x237   :  { %v417_v24 = vsel %vm410_vm15, %v415_v23, %v534_v16 }
 0x238   :  { %432 = vmatpush.xpose.msra.mxu2 %v417_v24 }
 0x23c   :  { %v407_v25 = vpop.xlane.xlu0 %406 }
 0x23d   :  { %v414_v26 = vmul.f32 -0.5, %v407_v25 }
 0x23f   :  { %v416_v27 = vsel %vm410_vm15, %v414_v26, %v536_v18 }
 0x240   :  { %433 = vmatpush.xpose.msra.mxu2 %v416_v27 }
 0x243   :  { %434 = vmatmul.f32.vlgmr.msra.gmra.mxu2 %v413_v28 }
 0x2c6   :  { %v435_v29 = vpop.f32.mrf.mxu2 }
 0x2c7   :  { %v438_v31 = vmul.f32 2.0, %v435_v29 }
 0x2c9   :  { %v439_v33 = vsub.f32 %v403_v32, %v438_v31 }
 0x2cb   :  { %v440_v34 = vmax.f32 %v439_v33, 0.0 }
 0x2cd   :  { %537 = vrsqrt.f32 %v440_v34  ;;  %vm448_vm1 = vcmp.eq.f32.partialorder %v440_v34, inf  ;;  %v451_v41 = vand.u32 2147483648, %v440_v34  ;;  %vm450_vm2 = vcmp.eq.f32.partialorder %v440_v34, 0.0 }
 0x2d3   :  { %v538_v36 = vpop.eup %537 }
 0x2d4   :  { %v442_v35 = vmul.f32 %v538_v36, %v440_v34 }
 0x2d6   :  { %v443_v37 = vmul.f32 %v538_v36, %v442_v35 }
 0x2d8   :  { %v444_v11 = vmul.f32 0.5, %v443_v37 }
 0x2da   :  { %v445_v39 = vsub.f32 1.5, %v444_v11 }
 0x2dc   :  { %v446_v30 = vmul.f32 %v538_v36, %v445_v39 }
 0x2de   :  { %v447_v40 = vmul.f32 %v446_v30, %v440_v34 }
 0x2e0   :  { %v449_v42 = vsel %vm448_vm1, %v440_v34, %v447_v40 }
 0x2e1   :  { %v452_v15 = vsel %vm450_vm2, %v451_v41, %v449_v42 }
 0x2e2   :  { %v453_v43 = vsub.f32 0.0, %v452_v15 }
 0x2e4   :  { %v454_v44 = vmax.f32 %v453_v43, -80.0 }
 0x2e6   :  { %v455_v45 = vmul.f32 1.442695, %v454_v44 }
 0x2e8   :  { %539 = vpow2.f32 %v455_v45 }
 0x2ee   :  { %v540_v17 = vpop.eup %539 }
 0x2ef   :  { %v457_v46 = vsel %vm84_vm0, %v540_v17, 0.0 }
 0x2f0   :  { %458 = vadd.xlane.f32.xlu1 %v457_v46 }
 0x363   :  { %v459_v50 = vpop.xlane.xlu1 %458 }
 0x364   :  { %541 = vrcp.f32 %v459_v50 }
 0x36a   :  { %v542_v51 = vpop.eup %541 }
 0x36b   :  { %v461_v52 = vmul.f32 %v542_v51, %v459_v50 }
 0x36d   :  { %v462_v53 = vsub.f32 2.0, %v461_v52 }
 0x36f   :  { %v463_v54 = vmul.f32 %v542_v51, %v462_v53 }
 0x371   :  { %v464_v55 = vmul.f32 %v540_v17, %v463_v54 }
 0x373   :  { %503 = vmatmul.msk.f32.vlgmr.msra.gmra.mxu3 %vm84_vm0, %v464_v55 }
 0x3f6   :  { %v487_v56 = vpop.f32.mrf.mxu3 }
 0x3f7   :  { %v490_v38 = vmax.f32 %v487_v56, 0.0 }
 0x3f9   :  { %v491_v57 = vmin.f32 %v490_v38, 1.0 }
 0x3fb   :  { %493 = vst.msk [vmem:[%s796_s11] sm:$0xff] %vm492_vm3, %v491_v57 }
 0x3fc   :  { %498 = vsyncpa [#allocation4], 1 }
 0x3fd   :  { %499 = vsyncpa [#allocation6], 1 }

</bundles_post_ra>
